<compile_context>
chip_gen: v5e
topology: v5e:2x2
jax: 0.10.0
libtpu: 0.0.40
codegen_flags: <defaults>
</compile_context>

<pallas_src>
import functools

import jax
import jax.numpy as jnp
from jax.experimental import pallas as pl
from jax.experimental.pallas import tpu as pltpu


def _interaction_kernel(x_ref, w1_ref, b1_ref, w2r_ref, b2_ref, w3_ref, b3_ref,
                        out_ref, *, negative_slope, fc3_as_reduction):
    # x arrives as f32 (no wrapper-side cast pass); cast to bf16 for the MXU here.
    x32 = x_ref[...]                                      # f32 [TB, D_in]
    xb = x32.astype(jnp.bfloat16)

    # fc1 (BatchNorm already folded into w1/b1) + leaky_relu, f32 epilogue.
    h = jnp.dot(xb, w1_ref[...], preferred_element_type=jnp.float32) + b1_ref[...]
    h = jnp.where(h >= 0, h, negative_slope * h)

    # dropout: eval mode -> identity (see TODO above).

    # fc2 + residual fused as ONE matmul:
    #   [h | x] @ [W2 ; Wr] + (b2 + br)
    lhs2 = jnp.concatenate([h, x32], axis=-1).astype(jnp.bfloat16)   # [TB, H+D_in]
    h2 = jnp.dot(lhs2, w2r_ref[...], preferred_element_type=jnp.float32) + b2_ref[...]
    h2 = jnp.where(h2 >= 0, h2, negative_slope * h2)

    # fc3: output_dim == 1 -> VPU multiply + lane reduction (w3 is a (1, H) f32
    # row); otherwise a normal MXU matmul with (H, out_dim) bf16 weights.
    if fc3_as_reduction:
        out = jnp.sum(h2 * w3_ref[...], axis=-1, keepdims=True)
    else:
        out = jnp.dot(h2.astype(w3_ref.dtype), w3_ref[...],
                      preferred_element_type=jnp.float32)
    out_ref[...] = out + b3_ref[...]


def _const_spec(shape):
    return pl.BlockSpec(shape, lambda i: (0, 0))          # all constants are 2-D


def _choose_tile(B, tile_b):
    """Pick a batch tile: 16-aligned (bf16 sublane packing), large by default,
    and >=2 grid steps when the whole batch would fit one tile (v7x megacore)."""
    tile_b = max(16, (tile_b // 16) * 16)
    if B > tile_b:
        return tile_b
    # Whole batch fits one tile: split in two aligned halves so both v7x TCs work.
    if B % 2 == 0 and (B // 2) % 16 == 0:
        return B // 2
    if B % 2 == 0 and (B // 2) % 8 == 0:
        return B // 2
    return B                                              # single full-batch block


def interaction_predictor_forward(x, params, *, negative_slope=0.01, bn_eps=1e-5,
                                  tile_b=1024):
    """x: [B, input_dim] -> squeezed output (like torch .squeeze())."""
    if x.dtype != jnp.float32:                            # module does x.float()
        x = x.astype(jnp.float32)
    B, d_in = x.shape
    hidden = params["w1"].shape[1]
    output_dim = params["w3"].shape[1]

    # --- trace-time algebraic folding (eval-mode semantics baked in) ---
    scale = params["gamma"] * jax.lax.rsqrt(params["rvar"] + bn_eps)         # (1, H)
    w1f = (params["w1"] * scale).astype(jnp.bfloat16)                        # (D_in, H)
    b1f = ((params["b1"] - params["rmean"]) * scale + params["beta"]).astype(jnp.float32)
    # Merge fc2 + residual into one K-stacked weight: [W2 ; Wr] -> (H + D_in, H)
    w2r = jnp.concatenate([params["w2"], params["wr"]], axis=0).astype(jnp.bfloat16)
    b2f = (params["b2"] + params["br"]).astype(jnp.float32)                  # (1, H)
    b3 = params["b3"].astype(jnp.float32)                                    # (1, out)

    fc3_as_reduction = (output_dim == 1)
    if fc3_as_reduction:
        w3 = params["w3"].reshape(1, hidden).astype(jnp.float32)             # (1, H)
    else:
        w3 = params["w3"].astype(jnp.bfloat16)                               # (H, out)

    # --- batch tiling ---
    tile = _choose_tile(B, tile_b)
    grid = (pl.cdiv(B, tile),)

    operands = (x, w1f, b1f, w2r, b2f, w3, b3)
    in_specs = [pl.BlockSpec((tile, d_in), lambda i: (i, 0))]
    in_specs += [_const_spec(op.shape) for op in operands[1:]]
    out_specs = pl.BlockSpec((tile, output_dim), lambda i: (i, 0))

    # VMEM budget: only raise the scoped limit when the estimate exceeds the
    # conservative 16 MiB default (v5e); cap below v7x's 64 MiB physical VMEM.
    weight_bytes = sum(int(op.size) * op.dtype.itemsize for op in operands[1:])
    tile_bytes = 2 * tile * (d_in + output_dim) * 4              # double-buffered x/out
    temp_bytes = tile * (3 * hidden + d_in) * 4                  # h, h2, concat slab
    est = 2 * weight_bytes + tile_bytes + temp_bytes
    vmem_limit = None
    if est > 16 * 1024 * 1024:
        vmem_limit = min(int(est * 1.25), 60 * 1024 * 1024)

    kernel = functools.partial(_interaction_kernel,
                               negative_slope=negative_slope,
                               fc3_as_reduction=fc3_as_reduction)

    out = pl.pallas_call(
        kernel,
        out_shape=jax.ShapeDtypeStruct((B, output_dim), jnp.float32),
        grid=grid,
        in_specs=in_specs,
        out_specs=out_specs,
        compiler_params=pltpu.CompilerParams(
            dimension_semantics=("parallel",),
            vmem_limit_bytes=vmem_limit),
    )(*operands)

    # torch .squeeze(): drop size-1 dims (output_dim == 1 -> shape (B,))
    return jnp.squeeze(out)


def init_params(key, input_dim, hidden_dim, output_dim):
    """kaiming_normal(mode='fan_out', nonlinearity='leaky_relu') matching the
    nn.Linear shapes; weights stored transposed as [in, out].  BN running stats
    are made non-trivial so the trace-time folding is actually exercised."""
    ks = jax.random.split(key, 8)

    def kaiming(k, fan_in, fan_out):
        std = jnp.sqrt(2.0 / fan_out)                     # gain sqrt(2), fan_out mode
        return jax.random.normal(k, (fan_in, fan_out), jnp.float32) * std

    return {
        "w1": kaiming(ks[0], input_dim, hidden_dim),
        "b1": jnp.zeros((1, hidden_dim), jnp.float32),
        "w2": kaiming(ks[1], hidden_dim, hidden_dim),
        "b2": jnp.zeros((1, hidden_dim), jnp.float32),
        "wr": kaiming(ks[2], input_dim, hidden_dim),
        "br": jnp.zeros((1, hidden_dim), jnp.float32),
        "w3": kaiming(ks[3], hidden_dim, output_dim),
        "b3": jnp.zeros((1, output_dim), jnp.float32),
        # BatchNorm1d params / running stats (non-trivial, eval mode).
        "gamma": 1.0 + 0.1 * jax.random.normal(ks[4], (1, hidden_dim), jnp.float32),
        "beta": 0.1 * jax.random.normal(ks[5], (1, hidden_dim), jnp.float32),
        "rmean": 0.1 * jax.random.normal(ks[6], (1, hidden_dim), jnp.float32),
        "rvar": 1.0 + 0.2 * jax.random.uniform(ks[7], (1, hidden_dim), jnp.float32),
    }


def reference_forward(x, params, *, negative_slope=0.01, bn_eps=1e-5):
    """Pure-JAX f32 reference (unfused), mirroring the PyTorch eval-mode forward."""
    x = x.astype(jnp.float32)
    identity = x @ params["wr"] + params["br"]
    h = x @ params["w1"] + params["b1"]
    h = (h - params["rmean"]) * jax.lax.rsqrt(params["rvar"] + bn_eps) * params["gamma"] \
        + params["beta"]
    h = jnp.where(h >= 0, h, negative_slope * h)
    h2 = h @ params["w2"] + params["b2"] + identity
    h2 = jnp.where(h2 >= 0, h2, negative_slope * h2)
    out = h2 @ params["w3"] + params["b3"]
    return jnp.squeeze(out)


if __name__ == "__main__":
    key = jax.random.PRNGKey(0)
    k_x, k_p = jax.random.split(key)

    batch = 96
    input_dim = 32
    hidden_dim = 64
    output_dim = 1

    x = jax.random.normal(k_x, (batch, input_dim), jnp.float32)
    params = init_params(k_p, input_dim, hidden_dim, output_dim)

    # Default tile_b: whole batch fits -> split into 2x48 tiles (v7x 2-TC path).
    out_a = interaction_predictor_forward(x, params)
    # Explicit small tile_b: 3 grid steps, exercising the batch-tiled pipeline.
    out_b = interaction_predictor_forward(x, params, tile_b=32)
    out_a, out_b = jax.block_until_ready((out_a, out_b))

    ref = reference_forward(x, params)
    assert out_a.shape == (batch,), out_a.shape
    assert out_b.shape == (batch,), out_b.shape

    # bf16 MXU inputs (f32 accumulation) -> normalized tolerance.
    ref_scale = float(jnp.max(jnp.abs(ref)))
    tol = 0.03 * ref_scale + 1e-3
    err_a = float(jnp.max(jnp.abs(out_a - ref)))
    err_b = float(jnp.max(jnp.abs(out_b - ref)))
    assert err_a <= tol, (err_a, ref_scale)
    assert err_b <= tol, (err_b, ref_scale)

    print("KERNEL_OK")
</pallas_src>

<mosaic_0001>
module attributes {stable_mosaic.version = 11 : i64} {
  func.func @_interaction_kernel(%arg0: i32, %arg1: memref<48x32xf32, #tpu.memory_space<vmem>>, %arg2: memref<32x64xbf16, #tpu.memory_space<vmem>>, %arg3: memref<1x64xf32, #tpu.memory_space<vmem>>, %arg4: memref<96x64xbf16, #tpu.memory_space<vmem>>, %arg5: memref<1x64xf32, #tpu.memory_space<vmem>>, %arg6: memref<1x64xf32, #tpu.memory_space<vmem>>, %arg7: memref<1x1xf32, #tpu.memory_space<vmem>>, %arg8: memref<48x1xf32, #tpu.memory_space<vmem>>) attributes {dimension_semantics = [#tpu.dimension_semantics<parallel>], iteration_bounds = array<i64: 2>, scalar_prefetch = 0 : i64, scratch_operands = 0 : i64, tpu.core_type = #tpu.core_type<tc>, window_params = [{transform_indices = @transform_0, window_bounds = array<i64: 48, 32>}, {pipeline_mode = #tpu.pipeline_mode<synchronous>, transform_indices = @transform_1, window_bounds = array<i64: 32, 64>}, {pipeline_mode = #tpu.pipeline_mode<synchronous>, transform_indices = @transform_2, window_bounds = array<i64: 1, 64>}, {pipeline_mode = #tpu.pipeline_mode<synchronous>, transform_indices = @transform_3, window_bounds = array<i64: 96, 64>}, {pipeline_mode = #tpu.pipeline_mode<synchronous>, transform_indices = @transform_4, window_bounds = array<i64: 1, 64>}, {pipeline_mode = #tpu.pipeline_mode<synchronous>, transform_indices = @transform_5, window_bounds = array<i64: 1, 64>}, {pipeline_mode = #tpu.pipeline_mode<synchronous>, transform_indices = @transform_6, window_bounds = array<i64: 1, 1>}, {transform_indices = @transform_7, window_bounds = array<i64: 48, 1>}]} {
    %c0 = arith.constant 0 : index
    %c0_0 = arith.constant 0 : index
    %0 = vector.load %arg1[%c0, %c0_0] : memref<48x32xf32, #tpu.memory_space<vmem>>, vector<48x32xf32>
    %1 = arith.truncf %0 : vector<48x32xf32> to vector<48x32xbf16>
    %c0_1 = arith.constant 0 : index
    %c0_2 = arith.constant 0 : index
    %2 = vector.load %arg2[%c0_1, %c0_2] : memref<32x64xbf16, #tpu.memory_space<vmem>>, vector<32x64xbf16>
    %cst = arith.constant dense<0.000000e+00> : vector<48x64xf32>
    %3 = tpu.matmul %1, %2, %cst {dimension_numbers = #tpu.dot_dimension_numbers<[1], [0], [0], [1], [0, 0, 1, 1], [], []>} : vector<48x32xbf16>, vector<32x64xbf16>, vector<48x64xf32> -> vector<48x64xf32>
    %c0_3 = arith.constant 0 : index
    %c0_4 = arith.constant 0 : index
    %4 = vector.load %arg3[%c0_3, %c0_4] : memref<1x64xf32, #tpu.memory_space<vmem>>, vector<1x64xf32>
    %5 = vector.broadcast %4 : vector<1x64xf32> to vector<48x64xf32>
    %6 = arith.addf %3, %5 : vector<48x64xf32>
    %cst_5 = arith.constant 0.000000e+00 : f32
    %7 = vector.broadcast %cst_5 : f32 to vector<48x64xf32>
    %8 = arith.cmpf oge, %6, %7 : vector<48x64xf32>
    %cst_6 = arith.constant 0.00999999977 : f32
    %9 = vector.broadcast %cst_6 : f32 to vector<48x64xf32>
    %10 = arith.mulf %9, %6 : vector<48x64xf32>
    %11 = arith.select %8, %6, %10 : vector<48x64xi1>, vector<48x64xf32>
    %12 = tpu.concatenate %11, %0 in 1 : vector<48x64xf32>, vector<48x32xf32> -> vector<48x96xf32>
    %13 = arith.truncf %12 : vector<48x96xf32> to vector<48x96xbf16>
    %c0_7 = arith.constant 0 : index
    %c0_8 = arith.constant 0 : index
    %14 = vector.load %arg4[%c0_7, %c0_8] : memref<96x64xbf16, #tpu.memory_space<vmem>>, vector<96x64xbf16>
    %cst_9 = arith.constant dense<0.000000e+00> : vector<48x64xf32>
    %15 = tpu.matmul %13, %14, %cst_9 {dimension_numbers = #tpu.dot_dimension_numbers<[1], [0], [0], [1], [0, 0, 1, 1], [], []>} : vector<48x96xbf16>, vector<96x64xbf16>, vector<48x64xf32> -> vector<48x64xf32>
    %c0_10 = arith.constant 0 : index
    %c0_11 = arith.constant 0 : index
    %16 = vector.load %arg5[%c0_10, %c0_11] : memref<1x64xf32, #tpu.memory_space<vmem>>, vector<1x64xf32>
    %17 = vector.broadcast %16 : vector<1x64xf32> to vector<48x64xf32>
    %18 = arith.addf %15, %17 : vector<48x64xf32>
    %cst_12 = arith.constant 0.000000e+00 : f32
    %19 = vector.broadcast %cst_12 : f32 to vector<48x64xf32>
    %20 = arith.cmpf oge, %18, %19 : vector<48x64xf32>
    %cst_13 = arith.constant 0.00999999977 : f32
    %21 = vector.broadcast %cst_13 : f32 to vector<48x64xf32>
    %22 = arith.mulf %21, %18 : vector<48x64xf32>
    %23 = arith.select %20, %18, %22 : vector<48x64xi1>, vector<48x64xf32>
    %c0_14 = arith.constant 0 : index
    %c0_15 = arith.constant 0 : index
    %24 = vector.load %arg6[%c0_14, %c0_15] : memref<1x64xf32, #tpu.memory_space<vmem>>, vector<1x64xf32>
    %25 = vector.broadcast %24 : vector<1x64xf32> to vector<48x64xf32>
    %26 = arith.mulf %23, %25 : vector<48x64xf32>
    %cst_16 = arith.constant dense<0.000000e+00> : vector<48xf32>
    %27 = vector.multi_reduction <add>, %26, %cst_16 [1] : vector<48x64xf32> to vector<48xf32>
    %28 = vector.shape_cast %27 : vector<48xf32> to vector<48x1xf32>
    %c0_17 = arith.constant 0 : index
    %c0_18 = arith.constant 0 : index
    %29 = vector.load %arg7[%c0_17, %c0_18] : memref<1x1xf32, #tpu.memory_space<vmem>>, vector<1x1xf32>
    %30 = vector.broadcast %29 : vector<1x1xf32> to vector<48x1xf32>
    %31 = arith.addf %28, %30 : vector<48x1xf32>
    %c0_19 = arith.constant 0 : index
    %c0_20 = arith.constant 0 : index
    %32 = vector.load %arg8[%c0_19, %c0_20] : memref<48x1xf32, #tpu.memory_space<vmem>>, vector<48x1xf32>
    tpu.vector_store %arg8[%c0_19, %c0_20], %31 {strides = array<i32>} : memref<48x1xf32, #tpu.memory_space<vmem>>, vector<48x1xf32>,
    return
  }
  func.func @transform_0(%arg0: i32) -> (i32, i32) {
    %c0_i32 = arith.constant 0 : i32
    %c0_i32_0 = arith.constant 0 : i32
    return %arg0, %c0_i32 : i32, i32
  }
  func.func @transform_1(%arg0: i32) -> (i32, i32) {
    %c0_i32 = arith.constant 0 : i32
    %c0_i32_0 = arith.constant 0 : i32
    %c0_i32_1 = arith.constant 0 : i32
    return %c0_i32, %c0_i32_0 : i32, i32
  }
  func.func @transform_2(%arg0: i32) -> (i32, i32) {
    %c0_i32 = arith.constant 0 : i32
    %c0_i32_0 = arith.constant 0 : i32
    %c0_i32_1 = arith.constant 0 : i32
    return %c0_i32, %c0_i32_0 : i32, i32
  }
  func.func @transform_3(%arg0: i32) -> (i32, i32) {
    %c0_i32 = arith.constant 0 : i32
    %c0_i32_0 = arith.constant 0 : i32
    %c0_i32_1 = arith.constant 0 : i32
    return %c0_i32, %c0_i32_0 : i32, i32
  }
  func.func @transform_4(%arg0: i32) -> (i32, i32) {
    %c0_i32 = arith.constant 0 : i32
    %c0_i32_0 = arith.constant 0 : i32
    %c0_i32_1 = arith.constant 0 : i32
    return %c0_i32, %c0_i32_0 : i32, i32
  }
  func.func @transform_5(%arg0: i32) -> (i32, i32) {
    %c0_i32 = arith.constant 0 : i32
    %c0_i32_0 = arith.constant 0 : i32
    %c0_i32_1 = arith.constant 0 : i32
    return %c0_i32, %c0_i32_0 : i32, i32
  }
  func.func @transform_6(%arg0: i32) -> (i32, i32) {
    %c0_i32 = arith.constant 0 : i32
    %c0_i32_0 = arith.constant 0 : i32
    %c0_i32_1 = arith.constant 0 : i32
    return %c0_i32, %c0_i32_0 : i32, i32
  }
  func.func @transform_7(%arg0: i32) -> (i32, i32) {
    %c0_i32 = arith.constant 0 : i32
    %c0_i32_0 = arith.constant 0 : i32
    return %arg0, %c0_i32 : i32, i32
  }
}

</mosaic_0001>

<bundles_post_ra>
// kernel: tpu_custom_call.1
= control target key start
LH: loop header
LB: loop body
LE: loop exit
PB: predicated region body
PF: predicated region fallthrough
CT: control target
= control target key end

     0   :  { %s754_s26 = smov 0   ;;  %s835_s0 = inlined_call_operand.vmem [shape: f32[96,32], index: 0, kind: input, shape index: {}]   ;;  %s836_s1 = inlined_call_operand.vmem [shape: bf16[32,64], index: 1, kind: input, shape index: {}]   ;;  %s837_s2 = inlined_call_operand.vmem [shape: f32[1,64], index: 2, kind: input, shape index: {}]   ;;  %s838_s3 = inlined_call_operand.vmem [shape: bf16[96,64], index: 3, kind: input, shape index: {}]   ;;  %s839_s4 = inlined_call_operand.vmem [shape: f32[1,64], index: 4, kind: input, shape index: {}]   ;;  %s840_s5 = inlined_call_operand.vmem [shape: f32[1,64], index: 5, kind: input, shape index: {}]   ;;  %s841_s6 = inlined_call_operand.<no memory space> [shape: f32[1,1], index: 6, kind: input, shape index: {}]   ;;  %s842_s7 = inlined_call_operand.vmem [shape: f32[96,1], index: 7, kind: output, shape index: {}]  }
   0x1   :  { %v12_v0 = vstv %s841_s6 }
   0x2   :  { %13 = vst [vmem:[#allocation2] sm:$0x1] %v12_v0 }
   0x3 LB: > { %s605_s27 = sadd.s32 4294967295, %s708_s26   ;;  %p609_p0 = scmp.ge.s32.totalorder %s708_s26, 1  ;;  %s708_s26 = sphi %s754_s26, %s19_s26  }
   0x4   : > { %p240_p1 = scmp.lt.s32.totalorder %s708_s26, 3 }
   0x6   : > { %p241_p2 = pnand %p609_p0, %p240_p1 }
   0x7   : > { %s272_s6 = smul.u32 (!%p241_p2), 6, %s605_s27  ;;  %s710_s17 = smov (!%p241_p2), 64  }
   0x8   : > { %244 = sbr.rel (%p241_p2) target bundleno = 452 (0x1c4), region = 48 }
   0x9   : > { %p273_p3 = scmp.lt.s32.totalorder (!%p241_p2), %s272_s6, 11 }
   0xd   : > { %v653_v1 = vld [vmem:[%s836_s1 + $0x8] sm:$0xff]  ;;  %v652_v3 = vld [vmem:[%s836_s1] sm:$0xff]  ;;  %s844_s6 = smov (!%p273_p3, %s272_s6), 11  ;;  %vm314_vm0 = vcmask 261120   ;;  %v657_v17 = vld [vmem:[%s838_s3 + $0x18] sm:$0xff]  ;;  %vm390_vm3 = vcmask 523264  }
   0xe   : > { %v659_v2 = vld [vmem:[%s838_s3 + $0x28] sm:$0xff]  ;;  %330 = vmatpush.bf16.msra.mxu0 %v653_v1  ;;  %660 = vmatpush.bf16.msra.mxu3 %v653_v1  ;;  %v658_v4 = vld [vmem:[%s838_s3 + $0x20] sm:$0xff]  ;;  %s610_s13 = sshll.u32 %s844_s6, 3  ;;  %v656_v18 = vld [vmem:[%s838_s3 + $0x10] sm:$0xff]  ;;  %vm452_vm4 = vcmask 785408   ;;  %vm542_vm15 = vcmask 7168  }
   0xf   : > { %662 = vmatpush.bf16.msra.mxu1 %v659_v2  ;;  %663 = vmatpush.bf16.msra.mxu2 %v659_v2  ;;  %s276_s16 = scalar_lea.vmem %s835_s0, %s610_s13  ;;  %v655_v19 = vld [vmem:[%s838_s3 + $0x8] sm:$0xff]  ;;  %v654_v20 = vld [vmem:[%s838_s3] sm:$0xff]  ;;  %s282_s12 = scalar_lea.vmem %s842_s7, %s610_s13 }
  0x10   : > { %v285_v5 = vld [vmem:[%s276_s16] sm:$0xff]  ;;  %v286_v6 = vld [vmem:[%s276_s16 + $0x8] sm:$0xff]  ;;  %v287_v7 = vld [vmem:[%s276_s16 + $0x10] sm:$0xff] }
  0x11   : > { %v291_v8 = vpack.c.bf16 %v286_v6, %v285_v5  ;;  %v288_v9 = vld [vmem:[%s276_s16 + $0x18] sm:$0xff]  ;;  %v289_v10 = vld [vmem:[%s276_s16 + $0x20] sm:$0xff]  ;;  %v290_v11 = vld [vmem:[%s276_s16 + $0x28] sm:$0xff]  ;;  %v688_v15 = vpack.i.bf16 %v286_v6, %v285_v5 }
  0x12   : > { %331 = vmatpush.bf16.msra.mxu0 %v652_v3  ;;  %661 = vmatpush.bf16.msra.mxu3 %v652_v3  ;;  %v292_v12 = vpack.c.bf16 %v288_v9, %v287_v7  ;;  %v683_v13 = vpack.i.bf16 %v290_v11, %v289_v10  ;;  %v693_v14 = vpack.i.bf16 %v288_v9, %v287_v7  ;;  %v698_v22 = vld [vmem:[%s837_s2] ss:$0 sm:$0xff] }
  0x13   : > { %664 = vmatpush.bf16.msra.mxu1 %v658_v4  ;;  %665 = vmatpush.bf16.msra.mxu2 %v658_v4  ;;  %v293_v16 = vpack.c.bf16 %v290_v11, %v289_v10  ;;  %v699_v0 = vld [vmem:[%s839_s4] ss:$0 sm:$0xff] }
  0x14   : > { %684 = vrot.lane.b32.xlu0 %v683_v13, %s710_s17  ;;  %694 = vrot.lane.b32.xlu1 %v693_v14, %s710_s17  ;;  %v700_v3 = vld [vmem:[%s840_s5] ss:$0 sm:$0xff] }
  0x15   : > { %620 = vmatmul.msk.bf16.vlgmr.msra.gmra.mxu0 %vm314_vm0, %v291_v8  ;;  %621 = vmatmul.msk.bf16.vlgmr.msra.gmra.mxu3 %vm314_vm0, %v292_v12 }
  0x16   : > { %464 = vmatpush.bf16.msrb.mxu0 %v659_v2 }
  0x17   : > { %666 = vmatpush.bf16.msra.mxu1 %v657_v17  ;;  %667 = vmatpush.bf16.msra.mxu2 %v657_v17 }
  0x1a   : > { %465 = vmatpush.bf16.msrb.mxu0 %v658_v4 }
  0x1b   : > { %668 = vmatpush.bf16.msra.mxu1 %v656_v18  ;;  %669 = vmatpush.bf16.msra.mxu2 %v656_v18 }
  0x1c   : > { %689 = vrot.lane.b32.xlu0 %v688_v15, %s710_s17 }
  0x1e   : > { %466 = vmatpush.bf16.msrb.mxu0 %v657_v17 }
  0x1f   : > { %670 = vmatpush.bf16.msra.mxu1 %v655_v19  ;;  %671 = vmatpush.bf16.msra.mxu2 %v655_v19 }
  0x22   : > { %467 = vmatpush.bf16.msrb.mxu0 %v656_v18 }
  0x23   : > { %672 = vmatpush.bf16.msra.mxu1 %v654_v20  ;;  %673 = vmatpush.bf16.msra.mxu2 %v654_v20 }
  0x25   : > { %622 = vmatmul.msk.bf16.gmra.mxu3 %vm314_vm0, %v293_v16 }
  0x26   : > { %468 = vmatpush.bf16.msrb.mxu0 %v655_v19 }
  0x2a   : > { %469 = vmatpush.bf16.msrb.mxu0 %v654_v20 }
  0x86   : > { %v685_v21 = vpop.permute.xlu0 %684  ;;  %v695_v38 = vpop.permute.xlu1 %694 }
  0x87   : > { %v697_v43 = vunpack.i.h.bf16 %v695_v38  ;;  %v696_v44 = vunpack.i.l.bf16 %v695_v38  ;;  %v687_v58 = vunpack.i.h.bf16 %v685_v21  ;;  %v686_v59 = vunpack.i.l.bf16 %v685_v21  ;;  %v701_v38 = vld [vmem:[#allocation2] ss:$0 sm:$0xff] }
  0x8e   : > { %v690_v26 = vpop.permute.xlu0 %689 }
  0x8f   : > { %v691_v29 = vunpack.i.l.bf16 %v690_v26  ;;  %v692_v33 = vunpack.i.h.bf16 %v690_v26 }
  0x92   : > { %v333_v23 = vpop.f32.mrf.mxu0 }
  0x93   : > { %v334_v24 = vadd.f32 %v698_v22, %v333_v23 }
  0x95   : > { %v354_v25 = vmul.f32 0.01, %v334_v24  ;;  %vm348_vm1 = vcmp.ge.f32.partialorder %v334_v24, 0.0 }
  0x97   : > { %v360_v30 = vsel %vm348_vm1, %v334_v24, %v354_v25 }
  0x98   : > { %v338_v27 = vpop.f32.mrf.mxu3  ;;  %v391_v35 = vsel %vm390_vm3, %v360_v30, %v691_v29 }
  0x99   : > { %v339_v32 = vadd.f32 %v698_v22, %v338_v27 }
  0x9a   : > { %v335_v28 = vpop.f32.mrf.mxu0 }
  0x9b   : > { %v336_v31 = vadd.f32 %v698_v22, %v335_v28  ;;  %v356_v37 = vmul.f32 0.01, %v339_v32  ;;  %vm350_vm5 = vcmp.ge.f32.partialorder %v339_v32, 0.0 }
  0x9d   : > { %vm349_vm2 = vcmp.ge.f32.partialorder %v336_v31, 0.0  ;;  %v355_v34 = vmul.f32 0.01, %v336_v31  ;;  %v362_v45 = vsel %vm350_vm5, %v339_v32, %v356_v37 }
  0x9e   : > { %v393_v48 = vsel %vm390_vm3, %v362_v45, %v696_v44 }
  0x9f   : > { %v361_v36 = vsel %vm349_vm2, %v336_v31, %v355_v34 }
  0xa0   : > { %v392_v39 = vsel %vm390_vm3, %v361_v36, %v692_v33  ;;  %v340_v41 = vpop.f32.mrf.mxu3 }
  0xa1   : > { %v397_v40 = vpack.c.bf16 %v392_v39, %v391_v35  ;;  %v341_v42 = vadd.f32 %v698_v22, %v340_v41 }
  0xa3   : > { %647 = vmatmul.msk.bf16.vlgmr.msrb.gmra.mxu0 %vm452_vm4, %v397_v40  ;;  %vm351_vm6 = vcmp.ge.f32.partialorder %v341_v42, 0.0  ;;  %v357_v46 = vmul.f32 0.01, %v341_v42 }
  0xa5   : > { %v363_v47 = vsel %vm351_vm6, %v341_v42, %v357_v46 }
  0xa6   : > { %v394_v49 = vsel %vm390_vm3, %v363_v47, %v697_v43 }
  0xa7   : > { %v398_v50 = vpack.c.bf16 %v394_v49, %v393_v48 }
  0xa8   : > { %v343_v51 = vpop.f32.mrf.mxu3 }
  0xa9   : > { %648 = vmatmul.msk.bf16.vlgmr.msra.gmra.mxu1 %vm452_vm4, %v398_v50  ;;  %v344_v52 = vadd.f32 %v698_v22, %v343_v51 }
  0xab   : > { %v358_v53 = vmul.f32 0.01, %v344_v52  ;;  %vm352_vm7 = vcmp.ge.f32.partialorder %v344_v52, 0.0 }
  0xad   : > { %v364_v56 = vsel %vm352_vm7, %v344_v52, %v358_v53 }
  0xae   : > { %v395_v61 = vsel %vm390_vm3, %v364_v56, %v686_v59 }
  0xb0   : > { %v345_v54 = vpop.f32.mrf.mxu3 }
  0xb1   : > { %v346_v55 = vadd.f32 %v698_v22, %v345_v54 }
  0xb3   : > { %vm353_vm8 = vcmp.ge.f32.partialorder %v346_v55, 0.0  ;;  %v359_v57 = vmul.f32 0.01, %v346_v55 }
  0xb5   : > { %v365_v60 = vsel %vm353_vm8, %v346_v55, %v359_v57 }
  0xb6   : > { %v396_v62 = vsel %vm390_vm3, %v365_v60, %v687_v58 }
  0xb7   : > { %v399_v63 = vpack.c.bf16 %v396_v62, %v395_v61 }
  0xb9   : > { %649 = vmatmul.msk.bf16.vlgmr.msra.gmra.mxu2 %vm452_vm4, %v399_v63 }
 0x120   : > { %v471_v1 = vpop.f32.mrf.mxu0 }
 0x121   : > { %v472_v2 = vadd.f32 %v699_v0, %v471_v1 }
 0x123   : > { %vm486_vm9 = vcmp.ge.f32.partialorder %v472_v2, 0.0  ;;  %v492_v4 = vmul.f32 0.01, %v472_v2 }
 0x125   : > { %v498_v5 = vsel %vm486_vm9, %v472_v2, %v492_v4 }
 0x126   : > { %v508_v6 = vmul.f32 %v700_v3, %v498_v5  ;;  %v476_v7 = vpop.f32.mrf.mxu1 }
 0x127   : > { %v477_v8 = vadd.f32 %v699_v0, %v476_v7 }
 0x128   : > { %v473_v9 = vpop.f32.mrf.mxu0  ;;  %v514_v10 = vsel %vm390_vm3, %v508_v6, 0.0 }
 0x129   : > { %v474_v11 = vadd.f32 %v699_v0, %v473_v9  ;;  %515 = vadd.xlane.f32.xlu1 %v514_v10  ;;  %v494_v12 = vmul.f32 0.01, %v477_v8  ;;  %vm488_vm10 = vcmp.ge.f32.partialorder %v477_v8, 0.0 }
 0x12b   : > { %v493_v13 = vmul.f32 0.01, %v474_v11  ;;  %v500_v14 = vsel %vm488_vm10, %v477_v8, %v494_v12  ;;  %vm487_vm11 = vcmp.ge.f32.partialorder %v474_v11, 0.0 }
 0x12c   : > { %v510_v15 = vmul.f32 %v700_v3, %v500_v14 }
 0x12d   : > { %v499_v19 = vsel %vm487_vm11, %v474_v11, %v493_v13 }
 0x12e   : > { %v478_v16 = vpop.f32.mrf.mxu1  ;;  %v520_v17 = vsel %vm390_vm3, %v510_v15, 0.0  ;;  %v509_v21 = vmul.f32 %v700_v3, %v499_v19 }
 0x12f   : > { %v479_v18 = vadd.f32 %v699_v0, %v478_v16  ;;  %521 = vadd.xlane.f32.xlu2 %v520_v17 }
 0x130   : > { %v517_v25 = vsel %vm390_vm3, %v509_v21, 0.0 }
 0x131   : > { %vm489_vm12 = vcmp.ge.f32.partialorder %v479_v18, 0.0  ;;  %v495_v20 = vmul.f32 0.01, %v479_v18 }
 0x133   : > { %v501_v22 = vsel %vm489_vm12, %v479_v18, %v495_v20 }
 0x134   : > { %v511_v23 = vmul.f32 %v700_v3, %v501_v22 }
 0x136   : > { %v523_v24 = vsel %vm390_vm3, %v511_v23, 0.0 }
 0x137   : > { %524 = vadd.xlane.f32.xlu0 %v523_v24  ;;  %518 = vadd.xlane.f32.xlu2 %v517_v25 }
 0x13c   : > { %v481_v26 = vpop.f32.mrf.mxu2 }
 0x13d   : > { %v482_v27 = vadd.f32 %v699_v0, %v481_v26 }
 0x13f   : > { %vm490_vm13 = vcmp.ge.f32.partialorder %v482_v27, 0.0  ;;  %v496_v28 = vmul.f32 0.01, %v482_v27 }
 0x141   : > { %v502_v29 = vsel %vm490_vm13, %v482_v27, %v496_v28 }
 0x142   : > { %v512_v30 = vmul.f32 %v700_v3, %v502_v29 }
 0x144   : > { %v483_v31 = vpop.f32.mrf.mxu2  ;;  %v526_v32 = vsel %vm390_vm3, %v512_v30, 0.0 }
 0x145   : > { %v484_v33 = vadd.f32 %v699_v0, %v483_v31  ;;  %527 = vadd.xlane.f32.xlu2 %v526_v32 }
 0x147   : > { %vm491_vm14 = vcmp.ge.f32.partialorder %v484_v33, 0.0  ;;  %v497_v34 = vmul.f32 0.01, %v484_v33 }
 0x149   : > { %v503_v35 = vsel %vm491_vm14, %v484_v33, %v497_v34 }
 0x14a   : > { %v513_v36 = vmul.f32 %v700_v3, %v503_v35 }
 0x14c   : > { %v529_v37 = vsel %vm390_vm3, %v513_v36, 0.0 }
 0x14d   : > { %530 = vadd.xlane.f32.xlu2 %v529_v37 }
 0x19c   : > { %v516_v39 = vpop.xlane.xlu1 %515 }
 0x19d   : > { %v536_v40 = vadd.f32 %v701_v38, %v516_v39 }
 0x19f   : > { %543 = vst.msk [vmem:[%s282_s12] sm:$0xff] %vm542_vm15, %v536_v40 }
 0x1a2   : > { %v522_v41 = vpop.xlane.xlu2 %521 }
 0x1a3   : > { %v538_v42 = vadd.f32 %v701_v38, %v522_v41 }
 0x1a5   : > { %545 = vst.msk [vmem:[%s282_s12 + $0x10] sm:$0xff] %vm542_vm15, %v538_v42 }
 0x1aa   : > { %v525_v43 = vpop.xlane.xlu0 %524  ;;  %v519_v44 = vpop.xlane.xlu2 %518 }
 0x1ab   : > { %v539_v45 = vadd.f32 %v701_v38, %v525_v43  ;;  %v537_v46 = vadd.f32 %v701_v38, %v519_v44 }
 0x1ad   : > { %546 = vst.msk [vmem:[%s282_s12 + $0x18] sm:$0xff] %vm542_vm15, %v539_v45 }
 0x1ae   : > { %544 = vst.msk [vmem:[%s282_s12 + $0x8] sm:$0xff] %vm542_vm15, %v537_v46 }
 0x1b8   : > { %v528_v47 = vpop.xlane.xlu2 %527 }
 0x1b9   : > { %v540_v48 = vadd.f32 %v701_v38, %v528_v47 }
 0x1bb   : > { %547 = vst.msk [vmem:[%s282_s12 + $0x20] sm:$0xff] %vm542_vm15, %v540_v48 }
 0x1c0   : > { %v531_v49 = vpop.xlane.xlu2 %530 }
 0x1c1   : > { %v541_v50 = vadd.f32 %v701_v38, %v531_v49 }
 0x1c3   : > { %548 = vst.msk [vmem:[%s282_s12 + $0x28] sm:$0xff] %vm542_vm15, %v541_v50 }
 0x1c4 PF: > { %s19_s26 = sadd.s32 1, %s708_s26  }
 0x1c5   : > { %p16_p4 = scmp.ge.s32.totalorder %s19_s26, 4  }
 0x1c7   :  { %18 = sbr.rel (!%p16_p4) target bundleno = 3 (0x3), region = 78 }

</bundles_post_ra>
